<compile_context>
chip_gen: v7x
topology: tpu7x:2x2x1
jax: 0.10.0
libtpu: 0.0.40
codegen_flags: <defaults>
</compile_context>

<pallas_src>
import jax
import jax.numpy as jnp
from jax.experimental import pallas as pl
from jax.experimental.pallas import tpu as pltpu


def _round_up(x, m):
    return ((x + m - 1) // m) * m


def housing_mlp_kernel(xt_ref, w1_ref, b1_ref, w2_ref, b2_ref, w3t_ref, b3_ref,
                       out_ref):
    """One batch tile, computed feature-major (batch on the lane axis).

    xt_ref : (F, TB)   input tile, x^T
    w1_ref : (H1, F)   PyTorch (out, in) layout -> h1^T = W1 @ x^T + b1
    b1_ref : (H1, 1)
    w2_ref : (H2, H1)
    b2_ref : (H2, 1)
    w3t_ref: (H2, 1)   W3 transposed; used as a VPU mat-vec (no N=1 MXU pass)
    b3_ref : (1, 1)
    out_ref: (1, TB)   lane-dense output row
    """
    xt = xt_ref[...]                                                   # (F, TB)

    h1 = jnp.dot(w1_ref[...], xt,
                 preferred_element_type=jnp.float32) + b1_ref[...]     # (H1, TB)
    h2 = jnp.dot(w2_ref[...], h1,
                 preferred_element_type=jnp.float32) + b2_ref[...]     # (H2, TB)

    # Linear(64 -> 1): elementwise multiply + sublane reduction (VPU/XLU),
    # result is already a lane-dense (1, TB) row.
    y = jnp.sum(h2 * w3t_ref[...], axis=0, keepdims=True) + b3_ref[...]

    out_ref[...] = y.astype(out_ref.dtype)


def housing_model_forward(x, params, *, tile_batch=512):
    """x: (B, F) float32. params: PyTorch-layout weights/biases."""
    B, F = x.shape
    w1, b1 = params["w1"], params["b1"]      # (H1, F), (H1,)
    w2, b2 = params["w2"], params["b2"]      # (H2, H1), (H2,)
    w3, b3 = params["w3"], params["b3"]      # (1, H2), (1,)
    H1 = w1.shape[0]
    H2 = w2.shape[0]

    # Lane-dense batch tile (multiple of 128), capped at tile_batch.
    tb = min(tile_batch, _round_up(B, 128))
    b_pad = _round_up(B, tb)
    grid = (b_pad // tb,)

    # Pad the batch and present it feature-major so the batch axis maps to
    # the 128-lane axis throughout the kernel.
    x_pad = jnp.pad(x, ((0, b_pad - B), (0, 0)))
    xt = x_pad.T                                              # (F, b_pad)

    b1c = b1.reshape(H1, 1)
    b2c = b2.reshape(H2, 1)
    w3t = w3.reshape(1, H2).T                                 # (H2, 1)
    b3c = b3.reshape(1, 1)

    out = pl.pallas_call(
        housing_mlp_kernel,
        out_shape=jax.ShapeDtypeStruct((1, b_pad), jnp.float32),
        grid=grid,
        in_specs=[
            pl.BlockSpec((F, tb), lambda i: (0, i)),      # x^T: streamed per tile
            pl.BlockSpec((H1, F), lambda i: (0, 0)),      # W1: resident
            pl.BlockSpec((H1, 1), lambda i: (0, 0)),      # b1
            pl.BlockSpec((H2, H1), lambda i: (0, 0)),     # W2
            pl.BlockSpec((H2, 1), lambda i: (0, 0)),      # b2
            pl.BlockSpec((H2, 1), lambda i: (0, 0)),      # W3^T
            pl.BlockSpec((1, 1), lambda i: (0, 0)),       # b3
        ],
        out_specs=pl.BlockSpec((1, tb), lambda i: (0, i)),
        compiler_params=pltpu.CompilerParams(
            dimension_semantics=("parallel",),
        ),
    )(xt, w1, b1c, w2, b2c, w3t, b3c)

    return out[0, :B].reshape(B, 1)


def init_params(key, in_features, hidden=64):
    """PyTorch-default-style uniform init, weights stored as (out, in)."""
    def linear_init(k, fan_in, fan_out):
        kw, kb = jax.random.split(k)
        bound = 1.0 / jnp.sqrt(jnp.float32(fan_in))
        w = jax.random.uniform(kw, (fan_out, fan_in), jnp.float32,
                               minval=-bound, maxval=bound)
        b = jax.random.uniform(kb, (fan_out,), jnp.float32,
                               minval=-bound, maxval=bound)
        return w, b

    k1, k2, k3 = jax.random.split(key, 3)
    w1, b1 = linear_init(k1, in_features, hidden)
    w2, b2 = linear_init(k2, hidden, hidden)
    w3, b3 = linear_init(k3, hidden, 1)
    return {"w1": w1, "b1": b1, "w2": w2, "b2": b2, "w3": w3, "b3": b3}


def reference_forward(x, p):
    """Pure-JAX reference, same math as the PyTorch module (y = x @ W.T + b)."""
    h1 = x @ p["w1"].T + p["b1"]
    h2 = h1 @ p["w2"].T + p["b2"]
    return h2 @ p["w3"].T + p["b3"]


if __name__ == "__main__":
    key = jax.random.PRNGKey(0)
    k_params, k_x1, k_x2 = jax.random.split(key, 3)

    in_features = 8          # e.g. California housing has 8 features
    params = init_params(k_params, in_features)

    # Small single-tile case (B=8 -> padded to one 128-wide tile).
    x_small = jax.random.normal(k_x1, (8, in_features), jnp.float32)
    y_small = jax.block_until_ready(housing_model_forward(x_small, params))
    ref_small = reference_forward(x_small, params)
    assert y_small.shape == (8, 1)
    assert jnp.allclose(y_small, ref_small, atol=1e-5, rtol=1e-5)

    # Multi-tile case exercising padding + a 3-point "parallel" grid.
    x_big = jax.random.normal(k_x2, (300, in_features), jnp.float32)
    y_big = jax.block_until_ready(
        housing_model_forward(x_big, params, tile_batch=128))
    ref_big = reference_forward(x_big, params)
    assert y_big.shape == (300, 1)
    assert jnp.allclose(y_big, ref_big, atol=1e-5, rtol=1e-5)

    print("KERNEL_OK")
</pallas_src>

<mosaic_0001>
module attributes {stable_mosaic.version = 11 : i64} {
  func.func @housing_mlp_kernel(%arg0: i32, %arg1: memref<8x128xf32, #tpu.memory_space<vmem>>, %arg2: memref<64x8xf32, #tpu.memory_space<vmem>>, %arg3: memref<64x1xf32, #tpu.memory_space<vmem>>, %arg4: memref<64x64xf32, #tpu.memory_space<vmem>>, %arg5: memref<64x1xf32, #tpu.memory_space<vmem>>, %arg6: memref<64x1xf32, #tpu.memory_space<vmem>>, %arg7: memref<1x1xf32, #tpu.memory_space<vmem>>, %arg8: memref<1x128xf32, #tpu.memory_space<vmem>>) attributes {dimension_semantics = [#tpu.dimension_semantics<parallel>], iteration_bounds = array<i64: 1>, scalar_prefetch = 0 : i64, scratch_operands = 0 : i64, tpu.core_type = #tpu.core_type<tc>, window_params = [{transform_indices = @transform_0, window_bounds = array<i64: 8, 128>}, {pipeline_mode = #tpu.pipeline_mode<synchronous>, transform_indices = @transform_1, window_bounds = array<i64: 64, 8>}, {pipeline_mode = #tpu.pipeline_mode<synchronous>, transform_indices = @transform_2, window_bounds = array<i64: 64, 1>}, {pipeline_mode = #tpu.pipeline_mode<synchronous>, transform_indices = @transform_3, window_bounds = array<i64: 64, 64>}, {pipeline_mode = #tpu.pipeline_mode<synchronous>, transform_indices = @transform_4, window_bounds = array<i64: 64, 1>}, {pipeline_mode = #tpu.pipeline_mode<synchronous>, transform_indices = @transform_5, window_bounds = array<i64: 64, 1>}, {pipeline_mode = #tpu.pipeline_mode<synchronous>, transform_indices = @transform_6, window_bounds = array<i64: 1, 1>}, {transform_indices = @transform_7, window_bounds = array<i64: 1, 128>}]} {
    %c0 = arith.constant 0 : index
    %c0_0 = arith.constant 0 : index
    %0 = vector.load %arg1[%c0, %c0_0] : memref<8x128xf32, #tpu.memory_space<vmem>>, vector<8x128xf32>
    %c0_1 = arith.constant 0 : index
    %c0_2 = arith.constant 0 : index
    %1 = vector.load %arg2[%c0_1, %c0_2] : memref<64x8xf32, #tpu.memory_space<vmem>>, vector<64x8xf32>
    %cst = arith.constant dense<0.000000e+00> : vector<64x128xf32>
    %2 = tpu.matmul %1, %0, %cst {dimension_numbers = #tpu.dot_dimension_numbers<[1], [0], [0], [1], [0, 0, 1, 1], [], []>} : vector<64x8xf32>, vector<8x128xf32>, vector<64x128xf32> -> vector<64x128xf32>
    %c0_3 = arith.constant 0 : index
    %c0_4 = arith.constant 0 : index
    %3 = vector.load %arg3[%c0_3, %c0_4] : memref<64x1xf32, #tpu.memory_space<vmem>>, vector<64x1xf32>
    %4 = vector.broadcast %3 : vector<64x1xf32> to vector<64x128xf32>
    %5 = arith.addf %2, %4 : vector<64x128xf32>
    %c0_5 = arith.constant 0 : index
    %c0_6 = arith.constant 0 : index
    %6 = vector.load %arg4[%c0_5, %c0_6] : memref<64x64xf32, #tpu.memory_space<vmem>>, vector<64x64xf32>
    %cst_7 = arith.constant dense<0.000000e+00> : vector<64x128xf32>
    %7 = tpu.matmul %6, %5, %cst_7 {dimension_numbers = #tpu.dot_dimension_numbers<[1], [0], [0], [1], [0, 0, 1, 1], [], []>} : vector<64x64xf32>, vector<64x128xf32>, vector<64x128xf32> -> vector<64x128xf32>
    %c0_8 = arith.constant 0 : index
    %c0_9 = arith.constant 0 : index
    %8 = vector.load %arg5[%c0_8, %c0_9] : memref<64x1xf32, #tpu.memory_space<vmem>>, vector<64x1xf32>
    %9 = vector.broadcast %8 : vector<64x1xf32> to vector<64x128xf32>
    %10 = arith.addf %7, %9 : vector<64x128xf32>
    %c0_10 = arith.constant 0 : index
    %c0_11 = arith.constant 0 : index
    %11 = vector.load %arg6[%c0_10, %c0_11] : memref<64x1xf32, #tpu.memory_space<vmem>>, vector<64x1xf32>
    %12 = vector.broadcast %11 : vector<64x1xf32> to vector<64x128xf32>
    %13 = arith.mulf %10, %12 : vector<64x128xf32>
    %cst_12 = arith.constant dense<0.000000e+00> : vector<128xf32>
    %14 = vector.multi_reduction <add>, %13, %cst_12 [0] : vector<64x128xf32> to vector<128xf32>
    %15 = vector.shape_cast %14 : vector<128xf32> to vector<1x128xf32>
    %c0_13 = arith.constant 0 : index
    %c0_14 = arith.constant 0 : index
    %16 = vector.load %arg7[%c0_13, %c0_14] : memref<1x1xf32, #tpu.memory_space<vmem>>, vector<1x1xf32>
    %17 = vector.broadcast %16 : vector<1x1xf32> to vector<1x128xf32>
    %18 = arith.addf %15, %17 : vector<1x128xf32>
    %c0_15 = arith.constant 0 : index
    %c0_16 = arith.constant 0 : index
    %19 = vector.load %arg8[%c0_15, %c0_16] : memref<1x128xf32, #tpu.memory_space<vmem>>, vector<1x128xf32>
    tpu.vector_store %arg8[%c0_15, %c0_16], %18 {strides = array<i32>} : memref<1x128xf32, #tpu.memory_space<vmem>>, vector<1x128xf32>,
    return
  }
  func.func @transform_0(%arg0: i32) -> (i32, i32) {
    %c0_i32 = arith.constant 0 : i32
    %c0_i32_0 = arith.constant 0 : i32
    return %c0_i32, %arg0 : i32, i32
  }
  func.func @transform_1(%arg0: i32) -> (i32, i32) {
    %c0_i32 = arith.constant 0 : i32
    %c0_i32_0 = arith.constant 0 : i32
    %c0_i32_1 = arith.constant 0 : i32
    return %c0_i32, %c0_i32_0 : i32, i32
  }
  func.func @transform_2(%arg0: i32) -> (i32, i32) {
    %c0_i32 = arith.constant 0 : i32
    %c0_i32_0 = arith.constant 0 : i32
    %c0_i32_1 = arith.constant 0 : i32
    return %c0_i32, %c0_i32_0 : i32, i32
  }
  func.func @transform_3(%arg0: i32) -> (i32, i32) {
    %c0_i32 = arith.constant 0 : i32
    %c0_i32_0 = arith.constant 0 : i32
    %c0_i32_1 = arith.constant 0 : i32
    return %c0_i32, %c0_i32_0 : i32, i32
  }
  func.func @transform_4(%arg0: i32) -> (i32, i32) {
    %c0_i32 = arith.constant 0 : i32
    %c0_i32_0 = arith.constant 0 : i32
    %c0_i32_1 = arith.constant 0 : i32
    return %c0_i32, %c0_i32_0 : i32, i32
  }
  func.func @transform_5(%arg0: i32) -> (i32, i32) {
    %c0_i32 = arith.constant 0 : i32
    %c0_i32_0 = arith.constant 0 : i32
    %c0_i32_1 = arith.constant 0 : i32
    return %c0_i32, %c0_i32_0 : i32, i32
  }
  func.func @transform_6(%arg0: i32) -> (i32, i32) {
    %c0_i32 = arith.constant 0 : i32
    %c0_i32_0 = arith.constant 0 : i32
    %c0_i32_1 = arith.constant 0 : i32
    return %c0_i32, %c0_i32_0 : i32, i32
  }
  func.func @transform_7(%arg0: i32) -> (i32, i32) {
    %c0_i32 = arith.constant 0 : i32
    %c0_i32_0 = arith.constant 0 : i32
    return %c0_i32, %arg0 : i32, i32
  }
}

</mosaic_0001>

<bundles_post_ra>
// kernel: tpu_custom_call.1
= control target key start
LH: loop header
LB: loop body
LE: loop exit
PB: predicated region body
PF: predicated region fallthrough
CT: control target
= control target key end

     0   :  { %s828_s0 = inlined_call_operand.vmem [shape: f32[8,128], index: 0, kind: input, shape index: {}]   ;;  %s829_s1 = inlined_call_operand.vmem [shape: f32[64,8], index: 1, kind: input, shape index: {}]   ;;  %s830_s2 = inlined_call_operand.vmem [shape: f32[64,1], index: 2, kind: input, shape index: {}]   ;;  %s831_s3 = inlined_call_operand.vmem [shape: f32[64,64], index: 3, kind: input, shape index: {}]   ;;  %s832_s4 = inlined_call_operand.vmem [shape: f32[64,1], index: 4, kind: input, shape index: {}]   ;;  %s833_s5 = inlined_call_operand.vmem [shape: f32[64,1], index: 5, kind: input, shape index: {}]   ;;  %s834_s6 = inlined_call_operand.<no memory space> [shape: f32[1,1], index: 6, kind: input, shape index: {}]   ;;  %s835_s7 = inlined_call_operand.hbm [shape: f32[1,128], index: 7, kind: output, shape index: {}]  }
   0x1   :  { %v12_v0 = vstv %s834_s6 }
   0x2   :  { %13 = vst [vmem:[#allocation2] sm:$0x1] %v12_v0 }
   0x3   :  { %v29_v1 = vld [vmem:[%s828_s0] sm:$0xff]  ;;  %vm86_vm0 = vcmask 64512   ;;  %v31_v3 = vld [vmem:[%s829_s1 + $0x8] sm:$0xff]  ;;  %v32_v4 = vld [vmem:[%s829_s1 + $0x10] sm:$0xff]  ;;  %v632_v5 = vmov 0  }
   0x4   :  { %v30_v2 = vld [vmem:[%s829_s1] sm:$0xff]  ;;  %538 = vmatprep.subr.mxu0 %v29_v1  ;;  %606 = vset.pattern.permute.xlu0 %v632_v5  ;;  %v40_v7 = vld [vmem:[%s830_s2 + $0x10] sm:$0xff]  ;;  %v33_v8 = vld [vmem:[%s829_s1 + $0x18] sm:$0xff] }
   0x5   :  { %540 = vmatprep.mubr.msk.f32.mxu0 %vm86_vm0, %v30_v2  ;;  %539 = vmatpush3.msra.mxu0 %v29_v1  ;;  %v38_v6 = vld [vmem:[%s830_s2] sm:$0xff]  ;;  %v39_v10 = vld [vmem:[%s830_s2 + $0x8] sm:$0xff]  ;;  %v41_v11 = vld [vmem:[%s830_s2 + $0x18] sm:$0xff] }
   0x6   :  { %541 = vmatmul.mubr.msk.f32.vlgmr.msra.gmra.mrb[0].mxu0 %vm86_vm0, %v31_v3  ;;  %607 = vset.pattern.permute.xlu1 %v632_v5  ;;  %v34_v9 = vld [vmem:[%s829_s1 + $0x20] sm:$0xff]  ;;  %v35_v12 = vld [vmem:[%s829_s1 + $0x28] sm:$0xff]  ;;  %v36_v13 = vld [vmem:[%s829_s1 + $0x30] sm:$0xff] }
   0x7   :  { %543 = vmatprep.mubr.msk.f32.mxu0 %vm86_vm0, %v32_v4  ;;  %48 = vperm.xlu0 %606, %v38_v6   ;;  %v42_v14 = vld [vmem:[%s830_s2 + $0x20] sm:$0xff]  ;;  %v43_v15 = vld [vmem:[%s830_s2 + $0x28] sm:$0xff] }
   0x8   :  { %58 = vperm.xlu1 %607, %v40_v7  }
   0xa   :  { %544 = vmatmul.mubr.msk.f32.gmra.mrb[2].mxu0 %vm86_vm0, %v33_v8 }
   0xb   :  { %546 = vmatprep.mubr.msk.f32.mxu0 %vm86_vm0, %v34_v9  ;;  %53 = vperm.xlu0 %606, %v39_v10  }
   0xc   :  { %63 = vperm.xlu1 %607, %v41_v11  }
   0xe   :  { %547 = vmatmul.mubr.msk.f32.gmra.mrb[4].mxu0 %vm86_vm0, %v35_v12 }
   0xf   :  { %14 = vsyncpa [#allocation4], 0  ;;  %549 = vmatprep.mubr.msk.f32.mxu0 %vm86_vm0, %v36_v13  ;;  %v37_v16 = vld [vmem:[%s829_s1 + $0x38] sm:$0xff]  ;;  %68 = vperm.xlu0 %606, %v42_v14   ;;  %v44_v17 = vld [vmem:[%s830_s2 + $0x30] sm:$0xff]  ;;  %vm272_vm1 = vcmask 523264  }
  0x10   :  { %73 = vperm.xlu1 %607, %v43_v15   ;;  %v45_v18 = vld [vmem:[%s830_s2 + $0x38] sm:$0xff]  ;;  %v224_v19 = vld [vmem:[%s832_s4] sm:$0xff]  ;;  %v225_v20 = vld [vmem:[%s832_s4 + $0x8] sm:$0xff] }
  0x11   :  { %v226_v21 = vld [vmem:[%s832_s4 + $0x10] sm:$0xff]  ;;  %v402_v22 = vld [vmem:[%s833_s5] sm:$0xff]  ;;  %v403_v23 = vld [vmem:[%s833_s5 + $0x8] sm:$0xff] }
  0x12   :  { %550 = vmatmul.mubr.msk.f32.gmra.mrb[6].mxu0 %vm86_vm0, %v37_v16  ;;  %v227_v24 = vld [vmem:[%s832_s4 + $0x18] sm:$0xff]  ;;  %v404_v25 = vld [vmem:[%s833_s5 + $0x10] sm:$0xff]  ;;  %v228_v26 = vld [vmem:[%s832_s4 + $0x20] sm:$0xff] }
  0x13   :  { %78 = vperm.xlu0 %606, %v44_v17   ;;  %v405_v27 = vld [vmem:[%s833_s5 + $0x18] sm:$0xff]  ;;  %v229_v28 = vld [vmem:[%s832_s4 + $0x28] sm:$0xff]  ;;  %v406_v29 = vld [vmem:[%s833_s5 + $0x20] sm:$0xff] }
  0x14   :  { %83 = vperm.xlu1 %607, %v45_v18   ;;  %v230_v30 = vld [vmem:[%s832_s4 + $0x30] sm:$0xff]  ;;  %v407_v31 = vld [vmem:[%s833_s5 + $0x28] sm:$0xff]  ;;  %v231_v32 = vld [vmem:[%s832_s4 + $0x38] sm:$0xff] }
  0x15   :  { %v408_v33 = vld [vmem:[%s833_s5 + $0x30] sm:$0xff]  ;;  %v409_v34 = vld [vmem:[%s833_s5 + $0x38] sm:$0xff]  ;;  %v471_v35 = vld [vmem:[#allocation2] sm:$0x1] }
  0x16   :  { %v216_v36 = vld [vmem:[%s831_s3] sm:$0xff]  ;;  %v218_v37 = vld [vmem:[%s831_s3 + $0x10] sm:$0xff]  ;;  %v217_v2 = vld [vmem:[%s831_s3 + $0x8] sm:$0xff] }
  0x17   :  { %234 = vperm.xlu0 %606, %v224_v19   ;;  %568 = vmatprep.mubr.msk.f32.mxu0 %vm272_vm1, %v216_v36  ;;  %v219_v3 = vld [vmem:[%s831_s3 + $0x18] sm:$0xff]  ;;  %v220_v4 = vld [vmem:[%s831_s3 + $0x20] sm:$0xff]  ;;  %v221_v5 = vld [vmem:[%s831_s3 + $0x28] sm:$0xff] }
  0x18   :  { %239 = vperm.xlu1 %607, %v225_v20   ;;  %571 = vmatprep.mubr.msk.f32.mxu1 %vm272_vm1, %v218_v37  ;;  %v222_v6 = vld [vmem:[%s831_s3 + $0x30] sm:$0xff]  ;;  %v223_v7 = vld [vmem:[%s831_s3 + $0x38] sm:$0xff]  ;;  %s633_s3 = smov [#allocation3]  }
  0x19   :  { %s489_s27 = sshll.u32 %s633_s3, 4  ;;  %s490_s27 = int_to_ptr.vmem [resolvable:$true] %s489_s27 }
  0x1a   :  { %s608_s28 = scalar_lea.vmem %s490_s27, 16  ;;  %s612_s29 = scalar_lea.vmem %s490_s27, 32 }
  0x1b   :  { %244 = vperm.xlu0 %606, %v226_v21   ;;  %p609_p0 = scmp.ne.s32.totalorder %s490_s27, %s608_s28  ;;  %p613_p1 = scmp.lt.s32.totalorder %s490_s27, %s490_s27 }
  0x1c   :  { %412 = vperm.xlu1 %607, %v402_v22   ;;  %p614_p2 = scmp.lt.s32.totalorder %s612_s29, %s608_s28 }
  0x1e   :  { %p615_p3 = por %p614_p2, %p613_p1 }
  0x1f   :  { %417 = vperm.xlu0 %606, %v403_v23  }
  0x20   :  { %249 = vperm.xlu1 %607, %v227_v24   ;;  %p616_p4 = pnand %p615_p3, %p609_p0 }
  0x23   :  { %422 = vperm.xlu0 %606, %v404_v25  }
  0x24   :  { %254 = vperm.xlu1 %607, %v228_v26  }
  0x27   :  { %427 = vperm.xlu0 %606, %v405_v27  }
  0x28   :  { %259 = vperm.xlu1 %607, %v229_v28  }
  0x2b   :  { %432 = vperm.xlu0 %606, %v406_v29  }
  0x2c   :  { %264 = vperm.xlu1 %607, %v230_v30  }
  0x2f   :  { %437 = vperm.xlu0 %606, %v407_v31  }
  0x30   :  { %269 = vperm.xlu1 %607, %v231_v32  }
  0x33   :  { %442 = vperm.xlu0 %606, %v408_v33  }
  0x34   :  { %447 = vperm.xlu1 %607, %v409_v34  }
  0x37   :  { %474 = vperm.xlu0 %606, %v471_v35  }
  0x86   :  { %v49_v38 = vpop.permute.xlu0 %48 }
  0x87   :  { %v59_v39 = vpop.permute.xlu1 %58 }
  0x8a   :  { %v54_v40 = vpop.permute.xlu0 %53 }
  0x8b   :  { %v64_v41 = vpop.permute.xlu1 %63 }
  0x8e   :  { %v69_v52 = vpop.permute.xlu0 %68 }
  0x8f   :  { %v74_v50 = vpop.permute.xlu1 %73 }
  0x92   :  { %v79_v61 = vpop.permute.xlu0 %78 }
  0x93   :  { %v84_v58 = vpop.permute.xlu1 %83 }
  0x96   :  { %v235_v8 = vpop.permute.xlu0 %234 }
  0x97   :  { %v240_v9 = vpop.permute.xlu1 %239 }
  0x9a   :  { %v245_v10 = vpop.permute.xlu0 %244 }
  0x9b   :  { %v413_v11 = vpop.permute.xlu1 %412 }
  0x9e   :  { %v418_v12 = vpop.permute.xlu0 %417 }
  0x9f   :  { %v250_v13 = vpop.permute.xlu1 %249 }
  0xa2   :  { %v423_v14 = vpop.permute.xlu0 %422 }
  0xa3   :  { %v255_v15 = vpop.permute.xlu1 %254 }
  0xa6   :  { %v428_v16 = vpop.permute.xlu0 %427 }
  0xa7   :  { %v260_v17 = vpop.permute.xlu1 %259 }
  0xaa   :  { %v433_v18 = vpop.permute.xlu0 %432 }
  0xab   :  { %v265_v26 = vpop.permute.xlu1 %264 }
  0xae   :  { %v438_v35 = vpop.permute.xlu0 %437 }
  0xd9   :  { %v542_v42 = vpop.f32.mrb[0].mxu0 }
  0xda   :  { %v183_v43 = vadd.f32 %v542_v42, %v54_v40  ;;  %v177_v44 = vpop.f32.mrb[1].mxu0  ;;  %v270_v40 = vpop.permute.xlu1 %269 }
  0xdb   :  { %v178_v45 = vadd.f32 %v177_v44, %v49_v38 }
  0xdd   :  { %v580_v46 = vpack.c.bf16 %v183_v43, %v178_v45  ;;  %v545_v47 = vpop.f32.mrb[2].mxu0 }
  0xde   :  { %v193_v48 = vadd.f32 %v545_v47, %v64_v41  ;;  %v187_v49 = vpop.f32.mrb[3].mxu0 }
  0xdf   :  { %v188_v51 = vadd.f32 %v187_v49, %v59_v39  ;;  %581 = vmatprep.subr.bf16.mxu0 %v580_v46  ;;  %596 = vmatprep.subr.bf16.mxu1 %v580_v46 }
  0xe0   :  { %583 = vmatpush3.bf16.msra.mxu0 %v580_v46  ;;  %600 = vmatpush3.bf16.msra.mxu1 %v580_v46 }
  0xe1   :  { %v584_v53 = vpack.c.bf16 %v193_v48, %v188_v51  ;;  %v548_v54 = vpop.f32.mrb[4].mxu0  ;;  %v443_v48 = vpop.permute.xlu0 %442 }
  0xe2   :  { %v203_v55 = vadd.f32 %v548_v54, %v74_v50  ;;  %v197_v56 = vpop.f32.mrb[5].mxu0  ;;  %v448_v51 = vpop.permute.xlu1 %447  ;;  %v477_v54 = vlaneseq }
  0xe3   :  { %v198_v57 = vadd.f32 %v197_v56, %v69_v52  ;;  %585 = vmatprep.subr.bf16.mxu0 %v584_v53  ;;  %597 = vmatprep.subr.bf16.mxu1 %v584_v53 }
  0xe4   :  { %587 = vmatpush3.bf16.msra.mxu0 %v584_v53  ;;  %601 = vmatpush3.bf16.msra.mxu1 %v584_v53 }
  0xe5   :  { %v588_v59 = vpack.c.bf16 %v203_v55, %v198_v57  ;;  %v551_v60 = vpop.f32.mrb[6].mxu0  ;;  %v478_v57 = vshrl.u32 %v477_v54, 7 }
  0xe6   :  { %v213_v62 = vadd.f32 %v551_v60, %v84_v58  ;;  %v207_v63 = vpop.f32.mrb[7].mxu0 }
  0xe7   :  { %v208_v0 = vadd.f32 %v207_v63, %v79_v61  ;;  %589 = vmatprep.subr.bf16.mxu0 %v588_v59  ;;  %598 = vmatprep.subr.bf16.mxu1 %v588_v59  ;;  %v479_v60 = vsub.s32 0, %v478_v57 }
  0xe8   :  { %591 = vmatpush3.bf16.msra.mxu0 %v588_v59  ;;  %602 = vmatpush3.bf16.msra.mxu1 %v588_v59 }
  0xe9   :  { %v592_v1 = vpack.c.bf16 %v213_v62, %v208_v0  ;;  %v475_v62 = vpop.permute.xlu0 %474 }
  0xea   :  { %v480_v0 = vrot.slane %v475_v62, %v479_v60 }
  0xeb   :  { %593 = vmatprep.subr.bf16.mxu0 %v592_v1  ;;  %599 = vmatprep.subr.bf16.mxu1 %v592_v1 }
  0xec   :  { %595 = vmatpush3.bf16.msra.mxu0 %v592_v1  ;;  %603 = vmatpush3.bf16.msra.mxu1 %v592_v1 }
  0xef   :  { %569 = vmatmul.mubr.msk.f32.vlgmr.msra.gmra.mrb[8].mxu0 %vm272_vm1, %v217_v2  ;;  %572 = vmatmul.mubr.msk.f32.vlgmr.msra.gmra.mrb[0].mxu1 %vm272_vm1, %v219_v3 }
  0xf0   :  { %574 = vmatprep.mubr.msk.f32.mxu1 %vm272_vm1, %v220_v4 }
  0xf3   :  { %575 = vmatmul.mubr.msk.f32.gmra.mrb[2].mxu1 %vm272_vm1, %v221_v5 }
  0xf4   :  { %577 = vmatprep.mubr.msk.f32.mxu1 %vm272_vm1, %v222_v6 }
  0xf7   :  { %578 = vmatmul.mubr.msk.f32.gmra.mrb[4].mxu1 %vm272_vm1, %v223_v7 }
 0x1c2   :  { %v570_v19 = vpop.f32.mrb[8].mxu0  ;;  %v573_v20 = vpop.f32.mrb[0].mxu1 }
 0x1c3   :  { %v369_v21 = vadd.f32 %v570_v19, %v240_v9  ;;  %v363_v22 = vpop.f32.mrb[9].mxu0  ;;  %v373_v23 = vpop.f32.mrb[1].mxu1  ;;  %v379_v28 = vadd.f32 %v573_v20, %v250_v13 }
 0x1c4   :  { %v364_v24 = vadd.f32 %v363_v22, %v235_v8  ;;  %v374_v25 = vadd.f32 %v373_v23, %v245_v10 }
 0x1c5   :  { %v451_v27 = vmul.f32 %v418_v12, %v369_v21  ;;  %v453_v36 = vmul.f32 %v428_v16, %v379_v28 }
 0x1c6   :  { %v450_v29 = vmul.f32 %v413_v11, %v364_v24  ;;  %v576_v30 = vpop.f32.mrb[2].mxu1  ;;  %v452_v33 = vmul.f32 %v423_v14, %v374_v25 }
 0x1c7   :  { %v383_v31 = vpop.f32.mrb[3].mxu1  ;;  %v389_v38 = vadd.f32 %v576_v30, %v260_v17 }
 0x1c8   :  { %v458_v32 = vadd.f32 %v451_v27, %v450_v29  ;;  %v384_v34 = vadd.f32 %v383_v31, %v255_v15 }
 0x1c9   :  { %v455_v45 = vmul.f32 %v438_v35, %v389_v38 }
 0x1ca   :  { %v459_v37 = vadd.f32 %v458_v32, %v452_v33  ;;  %v579_v39 = vpop.f32.mrb[4].mxu1  ;;  %v454_v42 = vmul.f32 %v433_v18, %v384_v34 }
 0x1cb   :  { %v393_v41 = vpop.f32.mrb[5].mxu1  ;;  %v399_v47 = vadd.f32 %v579_v39, %v270_v40 }
 0x1cc   :  { %v460_v43 = vadd.f32 %v459_v37, %v453_v36  ;;  %v394_v44 = vadd.f32 %v393_v41, %v265_v26 }
 0x1cd   :  { %v457_v52 = vmul.f32 %v448_v51, %v399_v47 }
 0x1ce   :  { %v461_v46 = vadd.f32 %v460_v43, %v454_v42  ;;  %v456_v49 = vmul.f32 %v443_v48, %v394_v44 }
 0x1d0   :  { %v462_v50 = vadd.f32 %v461_v46, %v455_v45 }
 0x1d2   :  { %v463_v53 = vadd.f32 %v462_v50, %v456_v49 }
 0x1d4   :  { %v464_v55 = vadd.f32 %v463_v53, %v457_v52 }
 0x1d6   :  { %v465_v56 = vrot.slane %v464_v55, 4 }
 0x1d8   :  { %v466_v58 = vadd.f32 %v465_v56, %v464_v55 }
 0x1da   :  { %v467_v59 = vrot.slane %v466_v58, 2 }
 0x1dc   :  { %v468_v61 = vadd.f32 %v467_v59, %v466_v58 }
 0x1de   :  { %v469_v63 = vrot.slane %v468_v61, 1 }
 0x1e0   :  { %v470_v1 = vadd.f32 %v469_v63, %v468_v61 }
 0x1e2   :  { %v481_v2 = vadd.f32 %v480_v0, %v470_v1 }
 0x1e4   :  { %482 = vst [vmem:[#allocation3] sm:$0x1] %v481_v2 }
 0x1e5   :  { %619 = shalt.err (!%p616_p4)
}
 0x1e6   :  { %s620_s9 = scalar_lea.hbm %s835_s7, 16 }
 0x1e7   :  { %p621_p5 = scmp.ne.s32.totalorder %s835_s7, %s620_s9  ;;  %p624_p6 = scmp.lt.u32.totalorder %s620_s9, %s835_s7 }
 0x1e9   :  { %p626_p7 = pnand %p624_p6, %p621_p5 }
 0x1eb   :  { %629 = shalt.err (!%p626_p7)
}
 0x1ec   :  { %492 = dma.vmem_to_hbm [thread:$0]  %s490_s27, 16, %s835_s7, [#allocation4]  }
 0x1ed   :  { %630 = dma.done.wait [#allocation4], 16  }
 0x1ee   :  { %631 = vsyncadd [#allocation4], 4294967280 }
 0x1ef   :  { %496 = vsyncpa [#allocation4], 1 }

</bundles_post_ra>
